<compile_context>
chip_gen: v7x
topology: tpu7x:2x2x1
jax: 0.10.0
libtpu: 0.0.40
codegen_flags: <defaults>
</compile_context>

<pallas_src>
import math

import jax
import jax.numpy as jnp
from jax.experimental import pallas as pl
from jax.experimental.pallas import tpu as pltpu

LANE = 128
SUBLANE = 8
NUM_PARTIALS = 2          # leading "parallel" grid axis (v7x megacore)
MAX_BLOCK_ROWS = 1024     # 1024 x 128 x 4B = 512 KiB per f32 buffer


def _round_up(a, b):
    return ((a + b - 1) // b) * b


def _stable_softplus(z):
    # log(1 + exp(z)) computed stably: max(z, 0) + log1p(exp(-|z|)).
    # Exactly 0 for z = -inf (padded elements), no NaN path.
    return jnp.maximum(z, 0.0) + jnp.log1p(jnp.exp(-jnp.abs(z)))


def _gan_criterion_kernel(real_ref, fake_ref, out_ref, acc_ref):
    i = pl.program_id(1)

    @pl.when(i == 0)
    def _init():
        acc_ref[...] = jnp.zeros_like(acc_ref)

    # Upcast in-register only (inputs stay in native dtype in HBM/VMEM).
    r = real_ref[...].astype(jnp.float32)
    f = fake_ref[...].astype(jnp.float32)

    # real: target=1 -> softplus(-x); fake: target=0 -> softplus(x).
    # Padded elements (+inf for real, -inf for fake) contribute exactly 0.
    loss = _stable_softplus(-r) + _stable_softplus(f)

    # Per-lane partial sums (no per-step cross-lane reduce, better precision).
    acc_ref[...] += jnp.sum(loss, axis=0, keepdims=True)

    @pl.when(i == pl.num_programs(1) - 1)
    def _finalize():
        # Lane-dense store; cross-lane reduction is done once in the wrapper.
        out_ref[...] = acc_ref[...].reshape(1, 1, LANE)


def _flatten_pad(x, pad_value, rows):
    """Flatten to 1D (native dtype), pad to rows*LANE with pad_value, reshape."""
    flat = jnp.ravel(x)
    n = flat.shape[0]
    total = rows * LANE
    padded = jnp.pad(flat, (0, total - n), constant_values=pad_value)
    return padded.reshape(rows, LANE)


def gan_criterion(real_score, fake_score):
    """JAX/Pallas equivalent of GANCriterion.forward."""
    # TODO(synk): only the module's default reduction='mean' is implemented.
    n_real = int(math.prod(real_score.shape))
    n_fake = int(math.prod(fake_score.shape))

    # Common row count so both streams share one grid (padding contributes 0,
    # so differing element counts are handled correctly).
    rows_needed = max(-(-n_real // LANE), -(-n_fake // LANE))
    block_rows = min(MAX_BLOCK_ROWS, _round_up(rows_needed, SUBLANE))
    rows = _round_up(rows_needed, NUM_PARTIALS * block_rows)
    nbh = rows // (NUM_PARTIALS * block_rows)   # blocks per parallel half

    # +inf pad for real -> softplus(-x)=0 ; -inf pad for fake -> softplus(x)=0.
    real2d = _flatten_pad(real_score, float("inf"), rows)
    fake2d = _flatten_pad(fake_score, float("-inf"), rows)

    partials = pl.pallas_call(
        _gan_criterion_kernel,
        out_shape=jax.ShapeDtypeStruct((NUM_PARTIALS, 1, LANE), jnp.float32),
        grid_spec=pltpu.PrefetchScalarGridSpec(
            num_scalar_prefetch=0,
            grid=(NUM_PARTIALS, nbh),
            in_specs=[
                pl.BlockSpec((block_rows, LANE), lambda p, i: (p * nbh + i, 0)),
                pl.BlockSpec((block_rows, LANE), lambda p, i: (p * nbh + i, 0)),
            ],
            out_specs=pl.BlockSpec((1, 1, LANE), lambda p, i: (p, 0, 0)),
            scratch_shapes=[pltpu.VMEM((1, LANE), jnp.float32)],
        ),
        compiler_params=pltpu.CompilerParams(
            dimension_semantics=("parallel", "arbitrary"),
            vmem_limit_bytes=32 * 1024 * 1024,
        ),
    )(real2d, fake2d)

    inv_count = 1.0 / float(n_real + n_fake)
    return jnp.sum(partials) * inv_count


def _reference(real_score, fake_score):
    # Pure-JAX reference (BCEWithLogitsLoss over concatenated scores/targets).
    x = jnp.concatenate(
        [jnp.ravel(real_score), jnp.ravel(fake_score)]).astype(jnp.float32)
    y = jnp.concatenate(
        [jnp.ones(real_score.size), jnp.zeros(fake_score.size)]).astype(jnp.float32)
    per_elem = jnp.maximum(x, 0.0) - x * y + jnp.log1p(jnp.exp(-jnp.abs(x)))
    return jnp.mean(per_elem)


if __name__ == "__main__":
    key = jax.random.PRNGKey(0)
    k1, k2 = jax.random.split(key)
    # Typical (small) discriminator patch outputs, NCHW.
    real_score = jax.random.normal(k1, (2, 1, 16, 16), dtype=jnp.float32)
    fake_score = jax.random.normal(k2, (2, 1, 16, 16), dtype=jnp.float32)

    loss = gan_criterion(real_score, fake_score)
    jax.block_until_ready(loss)

    ref = _reference(real_score, fake_score)
    assert jnp.allclose(loss, ref, rtol=1e-5, atol=1e-6), (loss, ref)
    print("KERNEL_OK")
</pallas_src>

<mosaic_0001>
module attributes {stable_mosaic.version = 11 : i64} {
  func.func @_gan_criterion_kernel(%arg0: i32, %arg1: i32, %arg2: memref<8x128xf32, #tpu.memory_space<vmem>>, %arg3: memref<8x128xf32, #tpu.memory_space<vmem>>, %arg4: memref<1x1x128xf32, #tpu.memory_space<vmem>>, %arg5: memref<1x128xf32, #tpu.memory_space<vmem>>) attributes {dimension_semantics = [#tpu.dimension_semantics<parallel>, #tpu.dimension_semantics<arbitrary>], iteration_bounds = array<i64: 2, 1>, scalar_prefetch = 0 : i64, scratch_operands = 1 : i64, tpu.core_type = #tpu.core_type<tc>, window_params = [{transform_indices = @transform_0, window_bounds = array<i64: 8, 128>}, {transform_indices = @transform_1, window_bounds = array<i64: 8, 128>}, {transform_indices = @transform_2, window_bounds = array<i64: 1, 1, 128>}]} {
    %c0_i32 = arith.constant 0 : i32
    %0 = arith.cmpi eq, %arg1, %c0_i32 : i32
    %1 = arith.extui %0 : i1 to i32
    %c0_i32_0 = arith.constant 0 : i32
    %2 = arith.cmpi ne, %1, %c0_i32_0 : i32
    scf.if %2 {
      %cst_15 = arith.constant 0.000000e+00 : f32
      %32 = vector.broadcast %cst_15 : f32 to vector<1x128xf32>
      %c0_16 = arith.constant 0 : index
      %c0_17 = arith.constant 0 : index
      %33 = vector.load %arg5[%c0_16, %c0_17] : memref<1x128xf32, #tpu.memory_space<vmem>>, vector<1x128xf32>
      tpu.vector_store %arg5[%c0_16, %c0_17], %32 {strides = array<i32>} : memref<1x128xf32, #tpu.memory_space<vmem>>, vector<1x128xf32>,
    } else {
    }
    %c0 = arith.constant 0 : index
    %c0_1 = arith.constant 0 : index
    %3 = vector.load %arg2[%c0, %c0_1] : memref<8x128xf32, #tpu.memory_space<vmem>>, vector<8x128xf32>
    %c0_2 = arith.constant 0 : index
    %c0_3 = arith.constant 0 : index
    %4 = vector.load %arg3[%c0_2, %c0_3] : memref<8x128xf32, #tpu.memory_space<vmem>>, vector<8x128xf32>
    %cst = arith.constant 0.000000e+00 : f32
    %5 = vector.broadcast %cst : f32 to vector<8x128xf32>
    %6 = arith.subf %5, %3 : vector<8x128xf32>
    %cst_4 = arith.constant 0.000000e+00 : f32
    %7 = vector.broadcast %cst_4 : f32 to vector<8x128xf32>
    %8 = arith.maximumf %6, %7 : vector<8x128xf32>
    %9 = math.absf %6 : vector<8x128xf32>
    %cst_5 = arith.constant 0.000000e+00 : f32
    %10 = vector.broadcast %cst_5 : f32 to vector<8x128xf32>
    %11 = arith.subf %10, %9 : vector<8x128xf32>
    %12 = math.exp %11 : vector<8x128xf32>
    %13 = math.log1p %12 : vector<8x128xf32>
    %14 = arith.addf %8, %13 : vector<8x128xf32>
    %cst_6 = arith.constant 0.000000e+00 : f32
    %15 = vector.broadcast %cst_6 : f32 to vector<8x128xf32>
    %16 = arith.maximumf %4, %15 : vector<8x128xf32>
    %17 = math.absf %4 : vector<8x128xf32>
    %cst_7 = arith.constant 0.000000e+00 : f32
    %18 = vector.broadcast %cst_7 : f32 to vector<8x128xf32>
    %19 = arith.subf %18, %17 : vector<8x128xf32>
    %20 = math.exp %19 : vector<8x128xf32>
    %21 = math.log1p %20 : vector<8x128xf32>
    %22 = arith.addf %16, %21 : vector<8x128xf32>
    %23 = arith.addf %14, %22 : vector<8x128xf32>
    %c0_8 = arith.constant 0 : index
    %c0_9 = arith.constant 0 : index
    %24 = vector.load %arg5[%c0_8, %c0_9] : memref<1x128xf32, #tpu.memory_space<vmem>>, vector<1x128xf32>
    %cst_10 = arith.constant dense<0.000000e+00> : vector<128xf32>
    %25 = vector.multi_reduction <add>, %23, %cst_10 [0] : vector<8x128xf32> to vector<128xf32>
    %26 = vector.shape_cast %25 : vector<128xf32> to vector<1x128xf32>
    %27 = arith.addf %24, %26 : vector<1x128xf32>
    %c0_11 = arith.constant 0 : index
    %c0_12 = arith.constant 0 : index
    %28 = vector.load %arg5[%c0_11, %c0_12] : memref<1x128xf32, #tpu.memory_space<vmem>>, vector<1x128xf32>
    tpu.vector_store %arg5[%c0_11, %c0_12], %27 {strides = array<i32>} : memref<1x128xf32, #tpu.memory_space<vmem>>, vector<1x128xf32>,
    %c0_i32_13 = arith.constant 0 : i32
    %29 = arith.cmpi eq, %arg1, %c0_i32_13 : i32
    %30 = arith.extui %29 : i1 to i32
    %c0_i32_14 = arith.constant 0 : i32
    %31 = arith.cmpi ne, %30, %c0_i32_14 : i32
    scf.if %31 {
      %c0_15 = arith.constant 0 : index
      %c0_16 = arith.constant 0 : index
      %32 = vector.load %arg5[%c0_15, %c0_16] : memref<1x128xf32, #tpu.memory_space<vmem>>, vector<1x128xf32>
      %33 = vector.shape_cast %32 : vector<1x128xf32> to vector<1x1x128xf32>
      %c0_17 = arith.constant 0 : index
      %c0_18 = arith.constant 0 : index
      %c0_19 = arith.constant 0 : index
      %34 = vector.load %arg4[%c0_17, %c0_18, %c0_19] : memref<1x1x128xf32, #tpu.memory_space<vmem>>, vector<1x1x128xf32>
      tpu.vector_store %arg4[%c0_17, %c0_18, %c0_19], %33 {strides = array<i32>} : memref<1x1x128xf32, #tpu.memory_space<vmem>>, vector<1x1x128xf32>,
    } else {
    }
    return
  }
  func.func @transform_0(%arg0: i32, %arg1: i32) -> (i32, i32) {
    %c1_i32 = arith.constant 1 : i32
    %0 = arith.muli %arg0, %c1_i32 : i32
    %1 = arith.addi %0, %arg1 : i32
    %c0_i32 = arith.constant 0 : i32
    %c0_i32_0 = arith.constant 0 : i32
    return %1, %c0_i32 : i32, i32
  }
  func.func @transform_1(%arg0: i32, %arg1: i32) -> (i32, i32) {
    %c1_i32 = arith.constant 1 : i32
    %0 = arith.muli %arg0, %c1_i32 : i32
    %1 = arith.addi %0, %arg1 : i32
    %c0_i32 = arith.constant 0 : i32
    %c0_i32_0 = arith.constant 0 : i32
    return %1, %c0_i32 : i32, i32
  }
  func.func @transform_2(%arg0: i32, %arg1: i32) -> (i32, i32, i32) {
    %c0_i32 = arith.constant 0 : i32
    %c0_i32_0 = arith.constant 0 : i32
    %c0_i32_1 = arith.constant 0 : i32
    return %arg0, %c0_i32, %c0_i32_0 : i32, i32, i32
  }
}

</mosaic_0001>

<bundles_post_ra>
// kernel: tpu_custom_call.1
= control target key start
LH: loop header
LB: loop body
LE: loop exit
PB: predicated region body
PF: predicated region fallthrough
CT: control target
= control target key end

     0   :  { %7 = vsyncpa [#allocation4], 0  ;;  %s858_s0 = inlined_call_operand.hbm [shape: f32[16,128], index: 0, kind: input, shape index: {}]   ;;  %s859_s1 = inlined_call_operand.hbm [shape: f32[16,128], index: 1, kind: input, shape index: {}]   ;;  %s860_s2 = inlined_call_operand.hbm [shape: f32[2,1,128], index: 2, kind: output, shape index: {}]  }
   0x1   :  { %9 = vsyncpa [#allocation4 + $0x1], 0 }
   0x2   :  { %10 = vsyncpa [#allocation7], 0 }
   0x3   :  { %12 = vsyncpa [#allocation7 + $0x1], 0 }
   0x4   :  { %13 = vsyncpa [#allocation5], 0 }
   0x5   :  { %15 = vsyncpa [#allocation5 + $0x1], 0  ;;  %s637_s9 = smov 0   ;;  %s639_s10 = smov 0  }
   0x6   :  { %s641_s11 = smov 0   ;;  %s643_s12 = smov 0  }
   0x7   :  { %s645_s13 = smov 0   ;;  %s647_s14 = smov 0  }
   0x8 LB: > { %s380_s15 = sadd.s32 4294967295, %s616_s14   ;;  %s381_s16 = sadd.s32 4294967294, %s616_s14   ;;  %s616_s14 = sphi %s647_s14, %s21_s14   ;;  %s612_s13 = sphi %s645_s13, %s880_s13   ;;  %s608_s12 = sphi %s643_s12, %s879_s12   ;;  %s604_s11 = sphi %s641_s11, %s878_s11   ;;  %s600_s10 = sphi %s639_s10, %s877_s10   ;;  %s596_s9 = sphi %s637_s9, %s876_s9  }
   0x9   : > { %s33_s17 = sadd.s32 1, %s612_s13  ;;  %s42_s18 = sadd.s32 1, %s604_s11 }
   0xa   : > { %p35_p0 = scmp.ge.s32.totalorder %s33_s17, 2  ;;  %p49_p1 = scmp.ne.s32.totalorder %s604_s11, %s600_s10 }
   0xb   : > { %p50_p2 = scmp.eq.s32.totalorder %s616_s14, 0  ;;  %p55_p3 = scmp.ne.s32.totalorder %s600_s10, %s596_s9 }
   0xc   : > { %s882_s17 = smov (%p35_p0, %s33_s17), 0  ;;  %p56_p5 = scmp.eq.s32.totalorder %s380_s15, 0 }
   0xd   : > { %p678_p4 = por %p50_p2, %p49_p1  ;;  %s39_s20 = ssub.s32 %s612_s13, %s882_s17 }
   0xe   : > { %p107_p6 = scmp.eq.s32.totalorder %s380_s15, 1  ;;  %p40_p7 = scmp.eq.s32.totalorder %s39_s20, 0 }
   0xf   : > { %p684_p8 = por %p56_p5, %p55_p3  ;;  %p113_p10 = scmp.eq.s32.totalorder %s381_s16, 1 }
  0x10   : > { %p688_p9 = por %p107_p6, %p49_p1  ;;  %p411_p13 = scmp.lt.s32.totalorder %s616_s14, 2 }
  0x11   : > { %s864_s21 = scalar_select %p684_p8, 1, 0 }
  0x12   : > { %s865_s22 = scalar_select %p688_p9, 1, 0 }
  0x13   : > { %s693_s23 = scalar_select %p40_p7, %s604_s11, %s42_s18  }
  0x14   : > { %p695_p11 = por %p113_p10, %p55_p3  ;;  %s702_s25 = sand.u32 1, %s604_s11  }
  0x15   : > { %s384_s26 = sshll.u32 %s702_s25, 3  ;;  %s385_s27 = sshll.u32 %s612_s13, 7 }
  0x16   : > { %s866_s24 = scalar_select %p695_p11, 1, 0 }
  0x17   : > { %s711_s30 = scalar_lea.hbm %s858_s0, %s385_s27  ;;  %s137_s3 = scalar_lea.vmem [#allocation3], %s384_s26 }
  0x18   : > { %s145_s4 = sshll.u32 %s137_s3, 4  ;;  %p719_p0 = pnand %p411_p13, %p678_p4  ;;  %s715_s4 = int_to_ptr.vmem [resolvable:$true] %s145_s4 }
  0x19   : > { %s134_s6 = scalar_lea.sflag [#allocation4], %s702_s25  ;;  %s470_s7 = scalar_lea.hbm %s711_s30, 128 }
  0x1a   : > { %p471_p3 = scmp.ne.s32.totalorder %s711_s30, %s470_s7  ;;  %p472_p5 = pneg %p719_p0 }
  0x1b   : > { %s475_s16 = scalar_lea.hbm %s858_s0, 256  ;;  %p476_p4 = scmp.lt.u32.totalorder %s711_s30, %s858_s0 }
  0x1c   : > { %p473_p6 = pnand %p472_p5, %p471_p3  ;;  %p477_p10 = scmp.lt.u32.totalorder %s475_s16, %s470_s7 }
  0x1d   : > { %p479_p12 = scmp.lt.u32.totalorder %s470_s7, %s711_s30 }
  0x1e   : > { %p474_p7 = pneg %p473_p6  ;;  %p478_p13 = por %p477_p10, %p476_p4 }
  0x20   : > { %p480_p1 = por %p479_p12, %p478_p13 }
  0x22   : > { %p481_p2 = pnand %p480_p1, %p474_p7 }
  0x24   : > { %484 = shalt.err (!%p481_p2)
}
  0x25   : > { %s485_s20 = scalar_lea.vmem %s715_s4, 128  ;;  %s618_s28 = smov [#allocation3]  }
  0x26   : > { %p486_p3 = scmp.ne.s32.totalorder %s715_s4, %s485_s20  ;;  %s490_s29 = sshll.u32 %s618_s28, 4  ;;  %s491_s29 = int_to_ptr.vmem [resolvable:$false] %s490_s29 }
  0x27   : > { %s492_s3 = scalar_lea.vmem %s491_s29, 256  ;;  %p493_p9 = scmp.lt.s32.totalorder %s715_s4, %s491_s29 }
  0x28   : > { %p488_p6 = pnand %p486_p3, %p472_p5  ;;  %p494_p4 = scmp.lt.s32.totalorder %s492_s3, %s485_s20 }
  0x2a   : > { %p489_p11 = pneg %p488_p6  ;;  %p495_p10 = por %p494_p4, %p493_p9 }
  0x2c   : > { %p496_p12 = pnand %p495_p10, %p489_p11 }
  0x2e   : > { %499 = shalt.err (!%p496_p12)
}
  0x2f   : > { %403 = dma.hbm_to_vmem [thread:$0]  (!%p719_p0), %s711_s30, 128, %s715_s4, %s134_s6  }
  0x30   : > { %p868_p1 = scmp.lt.s32.totalorder %s616_s14, 3  ;;  %p869_p2 = scmp.ge.s32.totalorder %s616_s14, 1 }
  0x31   : > { %s764_s16 = scalar_lea.hbm %s859_s1, %s385_s27  ;;  %s156_s18 = scalar_lea.vmem [#allocation6], %s384_s26 }
  0x32   : > { %p755_p7 = pnand %p869_p2, %p868_p1  ;;  %s164_s19 = sshll.u32 %s156_s18, 4  ;;  %s165_s19 = int_to_ptr.vmem [resolvable:$true] %s164_s19 }
  0x33   : > { %s153_s30 = scalar_lea.sflag [#allocation7], %s702_s25  ;;  %s500_s4 = scalar_lea.hbm %s764_s16, 128 }
  0x34   : > { %s870_s7 = scalar_select %p755_p7, 1, 0 }
  0x35   : > { %p501_p9 = scmp.ne.s32.totalorder %s764_s16, %s500_s4  ;;  %s505_s27 = scalar_lea.hbm %s859_s1, 256 }
  0x36   : > { %p506_p3 = scmp.lt.u32.totalorder %s764_s16, %s859_s1  ;;  %p507_p6 = scmp.lt.u32.totalorder %s505_s27, %s500_s4 }
  0x37   : > { %p503_p11 = pnand %p501_p9, %p472_p5  ;;  %p509_p10 = scmp.lt.u32.totalorder %s500_s4, %s764_s16 }
  0x38   : > { %p508_p4 = por %p507_p6, %p506_p3 }
  0x39   : > { %p504_p13 = pneg %p503_p11 }
  0x3a   : > { %p510_p12 = por %p509_p10, %p508_p4 }
  0x3c   : > { %p511_p1 = pnand %p510_p12, %p504_p13 }
  0x3e   : > { %514 = shalt.err (!%p511_p1)
}
  0x3f   : > { %s515_s25 = scalar_lea.vmem %s165_s19, 128  ;;  %s619_s26 = smov [#allocation6]  }
  0x40   : > { %p516_p2 = scmp.ne.s32.totalorder %s165_s19, %s515_s25  ;;  %s520_s3 = sshll.u32 %s619_s26, 4  ;;  %s521_s3 = int_to_ptr.vmem [resolvable:$false] %s520_s3 }
  0x41   : > { %s522_s8 = scalar_lea.vmem %s521_s3, 256  ;;  %p523_p8 = scmp.lt.s32.totalorder %s165_s19, %s521_s3 }
  0x42   : > { %p518_p9 = pnand %p516_p2, %p472_p5  ;;  %p524_p7 = scmp.lt.s32.totalorder %s522_s8, %s515_s25 }
  0x44   : > { %p519_p11 = pneg %p518_p9  ;;  %p525_p3 = por %p524_p7, %p523_p8 }
  0x46   : > { %p526_p6 = pnand %p525_p3, %p519_p11 }
  0x48   : > { %529 = shalt.err (!%p526_p6)
}
  0x49   : > { %406 = dma.hbm_to_vmem [thread:$0]  (!%p719_p0), %s764_s16, 128, %s165_s19, %s153_s30  }
  0x4a   : > { %p871_p13 = scmp.ne.s32.totalorder %s870_s7, 0 }
  0x4b   : > { %s791_s15 = sand.u32 (!%p871_p13), 1, %s600_s10   ;;  %p872_p5 = scmp.ne.s32.totalorder (!%p871_p13), %s864_s21, 0 }
  0x4c   : > { %173 = sbr.rel (%p871_p13) target bundleno = 162 (0xa2), region = 28  ;;  %s389_s18 = sshll.u32 (!%p871_p13), %s791_s15, 3 }
  0x4d   : > { %s176_s4 = scalar_lea.sflag (!%p871_p13), [#allocation4], %s791_s15  ;;  %s179_s6 = scalar_lea.vmem (!%p871_p13), [#allocation3], %s389_s18 }
  0x53   : > { %583 = dma.done.wait (%p872_p5), %s176_s4, 128  }
  0x54   : > { %585 = vsyncadd (%p872_p5), %s176_s4, 4294967168  ;;  %s185_s5 = scalar_lea.sflag [#allocation7], %s791_s15  ;;  %s188_s16 = scalar_lea.vmem [#allocation6], %s389_s18 }
  0x55   : > { %587 = dma.done.wait (%p872_p5), %s185_s5, 128  }
  0x56   : > { %589 = vsyncadd (%p872_p5), %s185_s5, 4294967168  ;;  %v620_v0 = vmov 0.0   ;;  %v220_v1 = vld [vmem:[%s179_s6] sm:$0xff]  ;;  %v221_v2 = vld [vmem:[%s188_s16] sm:$0xff]  ;;  %s212_s21 = scalar_lea.vmem [#allocation8], %s791_s15  ;;  %s391_s19 = sshll.u32 %s608_s12, 4 }
  0x57   : > { %219 = vst [vmem:[#allocation2] sm:$0x1] %v620_v0  ;;  %v222_v3 = vsub.f32 0.0, %v220_v1  ;;  %v239_v4 = vand.u32 2147483647, %v221_v2  ;;  %v238_v22 = vmax.f32 %v221_v2, 0.0  ;;  %s811_s27 = scalar_lea.hbm %s860_s2, %s391_s19 }
  0x58   : > { %s281_s7 = sshll.u32 %s212_s21, 4  ;;  %s269_s28 = scalar_lea.sflag [#allocation5], %s791_s15  ;;  %s806_s7 = int_to_ptr.vmem [resolvable:$true] %s281_s7 }
  0x59   : > { %v224_v5 = vand.u32 2147483647, %v222_v3  ;;  %v240_v6 = vsub.f32 0.0, %v239_v4  ;;  %v223_v26 = vmax.f32 %v222_v3, 0.0  ;;  %s530_s29 = scalar_lea.vmem %s806_s7, 16  ;;  %p873_p0 = scmp.ne.s32.totalorder %s865_s22, 0 }
  0x5a   : > { %p531_p8 = scmp.ne.s32.totalorder %s806_s7, %s530_s29  ;;  %s621_s25 = smov [#allocation8]  }
  0x5b   : > { %v225_v7 = vsub.f32 0.0, %v224_v5  ;;  %v241_v8 = vmul.f32 1.442695, %v240_v6  ;;  %s534_s12 = sshll.u32 %s621_s25, 4  ;;  %s535_s12 = int_to_ptr.vmem [resolvable:$false] %s534_s12 }
  0x5c   : > { %p532_p7 = pnand %p531_p8, %p873_p0  ;;  %s536_s26 = scalar_lea.vmem %s535_s12, 32 }
  0x5d   : > { %v226_v9 = vmul.f32 1.442695, %v225_v7  ;;  %462 = vpow2.f32 %v241_v8  ;;  %p537_p10 = scmp.lt.s32.totalorder %s806_s7, %s535_s12  ;;  %p538_p12 = scmp.lt.s32.totalorder %s536_s26, %s530_s29 }
  0x5e   : > { %v254_v38 = vld [vmem:[#allocation2] sm:$0x1]  ;;  %p533_p4 = pneg %p532_p7 }
  0x5f   : > { %464 = vpow2.f32 %v226_v9  ;;  %p539_p1 = por %p538_p12, %p537_p10 }
  0x61   : > { %p540_p2 = pnand %p539_p1, %p533_p4 }
  0x67   : > { %v463_v10 = vpop.eup %462 }
  0x68   : > { %v243_v11 = vadd.f32 1.0, %v463_v10  ;;  %v246_v14 = vmul.f32 -0.5, %v463_v10  ;;  %v249_v17 = vand.u32 2147483647, %v463_v10 }
  0x69   : > { %v465_v12 = vpop.eup %464 }
  0x6a   : > { %v228_v13 = vadd.f32 1.0, %v465_v12  ;;  %466 = vlog2.f32 %v243_v11  ;;  %v231_v15 = vmul.f32 -0.5, %v465_v12  ;;  %v247_v16 = vadd.f32 1.0, %v246_v14 }
  0x6b   : > { %v234_v19 = vand.u32 2147483647, %v465_v12  ;;  %vm250_vm0 = vcmp.lt.f32.partialorder %v249_v17, 0.0004427343 }
  0x6c   : > { %468 = vlog2.f32 %v228_v13  ;;  %v232_v18 = vadd.f32 1.0, %v231_v15  ;;  %v248_v20 = vmul.f32 %v463_v10, %v247_v16 }
  0x6d   : > { %vm235_vm1 = vcmp.lt.f32.partialorder %v234_v19, 0.0004427343 }
  0x6e   : > { %v233_v23 = vmul.f32 %v465_v12, %v232_v18 }
  0x74   : > { %v467_v21 = vpop.eup %466 }
  0x75   : > { %v245_v24 = vmul.f32 0.6931472, %v467_v21 }
  0x76   : > { %v469_v25 = vpop.eup %468 }
  0x77   : > { %v230_v27 = vmul.f32 0.6931472, %v469_v25  ;;  %v251_v28 = vsel %vm250_vm0, %v248_v20, %v245_v24 }
  0x78   : > { %v252_v29 = vadd.f32 %v251_v28, %v238_v22 }
  0x79   : > { %v236_v30 = vsel %vm235_vm1, %v233_v23, %v230_v27 }
  0x7a   : > { %v237_v31 = vadd.f32 %v236_v30, %v223_v26 }
  0x7c   : > { %v253_v32 = vadd.f32 %v252_v29, %v237_v31 }
  0x7e   : > { %v255_v33 = vrot.slane %v253_v32, 4 }
  0x80   : > { %v256_v34 = vadd.f32 %v255_v33, %v253_v32 }
  0x82   : > { %v257_v35 = vrot.slane %v256_v34, 2 }
  0x84   : > { %v258_v36 = vadd.f32 %v257_v35, %v256_v34 }
  0x86   : > { %v259_v37 = vrot.slane %v258_v36, 1 }
  0x88   : > { %v260_v39 = vadd.f32 %v259_v37, %v258_v36 }
  0x8a   : > { %v261_v40 = vadd.f32 %v260_v39, %v254_v38 }
  0x8c   : > { %262 = vst [vmem:[#allocation2] sm:$0x1] %v261_v40 }
  0x93   : > { %v266_v41 = vld [vmem:[#allocation2] sm:$0x1] }
  0x94   : > { %267 = vst [vmem:[%s212_s21] sm:$0x1] %v266_v41 }
  0x95   : > { %543 = shalt.err (!%p540_p2)
}
  0x96   : > { %s544_s3 = scalar_lea.hbm %s811_s27, 16  ;;  %s548_s18 = scalar_lea.hbm %s860_s2, 32 }
  0x97   : > { %p545_p9 = scmp.ne.s32.totalorder %s811_s27, %s544_s3  ;;  %p549_p6 = scmp.lt.u32.totalorder %s811_s27, %s860_s2 }
  0x98   : > { %p550_p13 = scmp.lt.u32.totalorder %s548_s18, %s544_s3  ;;  %p552_p8 = scmp.lt.u32.totalorder %s544_s3, %s811_s27 }
  0x99   : > { %p546_p11 = pnand %p545_p9, %p873_p0 }
  0x9a   : > { %p551_p5 = por %p550_p13, %p549_p6 }
  0x9b   : > { %p547_p3 = pneg %p546_p11 }
  0x9c   : > { %p553_p7 = por %p552_p8, %p551_p5 }
  0x9e   : > { %p554_p4 = pnand %p553_p7, %p547_p3 }
  0xa0   : > { %557 = shalt.err (!%p554_p4)
}
  0xa1   : > { %398 = dma.vmem_to_hbm [thread:$0]  (%p873_p0), %s806_s7, 16, %s811_s27, %s269_s28  }
  0xa2 PF: > { %s293_s5 = sand.u32 1, %s596_s9   ;;  %p874_p10 = scmp.ne.s32.totalorder %s866_s24, 0 }
  0xa3   : > { %p875_p12 = scmp.ge.s32.totalorder %s616_s14, 2  ;;  %s294_s16 = scalar_lea.sflag [#allocation5], %s293_s5 }
  0xa5   : > { %p408_p1 = pnand %p875_p12, %p874_p10 }
  0xa7   : > { %591 = dma.done.wait (!%p408_p1), %s294_s16, 16  }
  0xa8   : > { %593 = vsyncadd (!%p408_p1), %s294_s16, 4294967280  ;;  %s21_s14 = sadd.s32 1, %s616_s14   ;;  %s876_s9 = smov %s600_s10 }
  0xa9   : > { %p18_p2 = scmp.ge.s32.totalorder %s21_s14, 4   ;;  %s877_s10 = smov %s604_s11 }
  0xaa   : > { %s878_s11 = smov %s693_s23  ;;  %s879_s12 = smov %s612_s13 }
  0xab   : > { %s880_s13 = smov %s882_s17  ;;  %20 = sbr.rel (!%p18_p2) target bundleno = 8 (0x8), region = 94 }
  0xb2   :  { %298 = vsyncpa [#allocation4], 1 }
  0xb3   :  { %300 = vsyncpa [#allocation4 + $0x1], 1 }
  0xb4   :  { %301 = vsyncpa [#allocation7], 1 }
  0xb5   :  { %303 = vsyncpa [#allocation7 + $0x1], 1 }
  0xb6   :  { %304 = vsyncpa [#allocation5], 1 }
  0xb7   :  { %306 = vsyncpa [#allocation5 + $0x1], 1 }

</bundles_post_ra>
